<compile_context>
chip_gen: v7x
topology: tpu7x:2x2x1
jax: 0.10.0
libtpu: 0.0.40
codegen_flags: <defaults>
</compile_context>

<pallas_src>
import functools
import math

import jax
import jax.numpy as jnp
from jax import lax
from jax.experimental import pallas as pl
from jax.experimental.pallas import tpu as pltpu


_EPS_SQ = 1e-24  # (1e-12)^2 -> preserves F.normalize's clamp-on-norm semantics


def _round_up(x, m):
    return ((x + m - 1) // m) * m


def _cdiv(a, b):
    return (a + b - 1) // b


def _vmem_capacity_bytes():
    """Per-core VMEM capacity; conservative 64 MiB fallback (v7x)."""
    try:
        info = pltpu.get_tpu_info()
        cap = getattr(info, "vmem_capacity_bytes", None)
        if cap:
            return int(cap)
    except Exception:
        pass
    return 64 * 1024 * 1024


def _num_tensorcores():
    """Best-effort TensorCores-per-chip (megacore) detection."""
    try:
        kind = str(getattr(jax.devices()[0], "device_kind", "")).lower()
        if "v4" in kind or "v7" in kind or "tpu7" in kind:
            return 2
    except Exception:
        pass
    return 1


# ---------------------------------------------------------------------------
# Pass 1: fused cast + ragged-edge masking + row L2-normalize + zero-pad.
# Reads the raw (rows, d) array with (tile_rows, d_pad) blocks (ragged reads
# past the array edge are masked in-kernel) and writes a lane-dense, zero-
# padded (rows_out, d_pad) result in the MXU dtype.
# ---------------------------------------------------------------------------
def _normalize_pad_kernel(x_ref, o_ref, *, n_rows, n_cols, tile_rows):
    i = pl.program_id(0)
    x = x_ref[...].astype(jnp.float32)                      # (tile_rows, d_pad)
    tr, dp = x.shape
    row = lax.broadcasted_iota(jnp.int32, (tr, 1), 0) + i * tile_rows
    col = lax.broadcasted_iota(jnp.int32, (1, dp), 1)
    valid = jnp.logical_and(row < n_rows, col < n_cols)
    x = jnp.where(valid, x, 0.0)                            # kill ragged garbage
    ssq = jnp.sum(x * x, axis=-1, keepdims=True)
    xn = x * lax.rsqrt(jnp.maximum(ssq, jnp.float32(_EPS_SQ)))
    o_ref[...] = xn.astype(o_ref.dtype)                     # padded rows/cols -> 0


def _normalize_rows(arr, *, rows_out, d_pad, tile_rows, out_dtype, vmem_limit):
    n, d = arr.shape
    kern = functools.partial(_normalize_pad_kernel,
                             n_rows=n, n_cols=d, tile_rows=tile_rows)
    return pl.pallas_call(
        kern,
        out_shape=jax.ShapeDtypeStruct((rows_out, d_pad), out_dtype),
        grid=(rows_out // tile_rows,),
        in_specs=[pl.BlockSpec((tile_rows, d_pad), lambda i: (i, 0))],
        out_specs=pl.BlockSpec((tile_rows, d_pad), lambda i: (i, 0)),
        compiler_params=pltpu.CompilerParams(
            dimension_semantics=("parallel",),
            vmem_limit_bytes=vmem_limit),
    )(arr)


# ---------------------------------------------------------------------------
# Pass 2: fused cosine matmul + CosFace per-sample loss.
# Grid = (batch tiles [parallel], class tiles [arbitrary / reduction]).
# ---------------------------------------------------------------------------
def _cosface_kernel(t_ref, x_ref, p_ref, out_ref, cpos_ref, nsum_ref, *,
                    alpha, mrg, n_valid_rows, n_valid_classes, tile_b, tile_c):
    i = pl.program_id(0)
    k = pl.program_id(1)

    @pl.when(k == 0)
    def _init():
        cpos_ref[...] = jnp.zeros_like(cpos_ref)
        nsum_ref[...] = jnp.zeros_like(nsum_ref)

    # (TILE_B, TILE_C) cosine block on the MXU; f32 accumulation.
    cos = lax.dot_general(
        x_ref[...], p_ref[...],
        dimension_numbers=(((1,), (1,)), ((), ())),
        preferred_element_type=jnp.float32)

    # Single (1, TILE_C) class-index row compared against tile-shifted labels
    # (avoids a full (TILE_B, TILE_C) iota + add every class step).
    shift = k * tile_c
    cls_row = lax.broadcasted_iota(jnp.int32, (1, tile_c), 1)   # (1, TILE_C)
    lab = t_ref[...] - shift                                    # (TILE_B, 1)
    is_pos = cls_row == lab                                     # (TILE_B, TILE_C)
    # Padded / out-of-range class columns must not contribute to the neg sum.
    is_neg = jnp.logical_and(cls_row != lab,
                             cls_row < (n_valid_classes - shift))

    pos_cos = jnp.where(is_pos, cos, 0.0)
    neg_exp = jnp.where(is_neg, jnp.exp(alpha * cos), 0.0)      # single big exp

    # Lane-fold TILE_C -> 128 with plain VPU adds; the cross-lane (XLU)
    # reduction happens only once per batch tile, in the finalize step.
    def fold128(v):
        acc = v[:, 0:128]
        for g in range(1, tile_c // 128):
            acc = acc + v[:, g * 128:(g + 1) * 128]
        return acc

    cpos_ref[...] += fold128(pos_cos)
    nsum_ref[...] += fold128(neg_exp)

    @pl.when(k == pl.num_programs(1) - 1)
    def _finalize():
        cpos = jnp.sum(cpos_ref[...], axis=-1, keepdims=True)   # cos at label
        nsum = jnp.sum(nsum_ref[...], axis=-1, keepdims=True)   # neg exp sum
        # Positive exp only on the gathered (TILE_B, 1) cosine.
        pos_exp = jnp.exp(-alpha * (cpos - mrg))
        loss = jnp.log(1.0 + pos_exp * nsum)
        # Zero padded batch rows so the wrapper can just sum / B.
        row = lax.broadcasted_iota(jnp.int32, (tile_b, 1), 0) + i * tile_b
        out_ref[...] = jnp.where(row < n_valid_rows, loss, 0.0)


def cosface_loss(X, T, P, *, mrg=0.35, alpha=64.0, use_bf16_mxu=False):
    """Pallas implementation of CosFaceLoss.forward(X, T) with proxies P."""
    B, D = X.shape
    C, D2 = P.shape
    assert D == D2

    mxu_dtype = jnp.bfloat16 if use_bf16_mxu else jnp.float32
    itemsize = 2 if use_bf16_mxu else 4

    # Lane-dense embedding dim (zero columns are exact no-ops for norms/dots).
    D_pad = _round_up(D, 128)

    # ---- generation-aware VMEM budget ----------------------------------
    vmem_cap = _vmem_capacity_bytes()           # 128 MiB (v5e/v6e) / 64 MiB (v7x)
    budget = int(vmem_cap * 0.6)                # headroom for compiler scratch
    vmem_limit = int(vmem_cap * 0.75)
    n_tc = _num_tensorcores()

    # ---- batch tile -----------------------------------------------------
    r8 = _round_up(B, 8)
    TILE_B = min(r8, 256)
    if n_tc >= 2 and r8 <= 256 and B >= 16:
        # Keep >= n_tc batch tiles so the "parallel" axis shards across both
        # TensorCores (v7x); single-TC chips keep one big tile to avoid
        # re-streaming the proxies.
        # TODO(synk): for tiny B on multi-TC chips, split the class axis per
        # core with partial (cpos, nsum) outputs combined in the wrapper.
        TILE_B = _round_up(_cdiv(B, n_tc), 8)

    def _main_vmem_bytes(tb, tc):
        pn = 2 * tc * D_pad * itemsize          # streamed Pn, double-buffered
        xn = 2 * tb * D_pad * itemsize          # resident Xn tile
        lab = 2 * tb * 128 * 4                  # labels (lane-padded int32)
        out = 2 * tb * 128 * 4                  # per-sample output
        scr = 2 * tb * 128 * 4                  # cpos + nsum accumulators
        tmp = 4 * tb * tc * 4                   # cos/exp/mask temporaries
        return pn + xn + lab + out + scr + tmp

    while TILE_B > 8 and _main_vmem_bytes(TILE_B, 128) > budget:
        TILE_B = max(8, _round_up(TILE_B // 2, 8))
    B_pad = _round_up(B, TILE_B)

    # ---- class tile: largest multiple of 128 fitting the budget ---------
    c128 = _round_up(C, 128)
    tile_c_cap = min(c128, 2048)
    TILE_C = 128
    for cand in sorted({tile_c_cap, 2048, 1024, 512, 256, 128}, reverse=True):
        if cand <= tile_c_cap and _main_vmem_bytes(TILE_B, cand) <= budget:
            TILE_C = cand
            break
    C_pad = _round_up(C, TILE_C)

    Tp = T.astype(jnp.int32).reshape(B, 1)

    # ---- pass 1: normalize X and P once (fused cast + pad, no XLA pad op)
    TR_P = min(TILE_C, 512)
    while TR_P > 128 and 2 * TR_P * D_pad * (4 + itemsize) > budget:
        TR_P //= 2
    Pn = _normalize_rows(P, rows_out=C_pad, d_pad=D_pad, tile_rows=TR_P,
                         out_dtype=mxu_dtype, vmem_limit=vmem_limit)
    Xn = _normalize_rows(X, rows_out=B_pad, d_pad=D_pad, tile_rows=TILE_B,
                         out_dtype=mxu_dtype, vmem_limit=vmem_limit)

    # ---- pass 2: fused Xn @ Pn^T + CosFace per-sample loss ---------------
    kernel = functools.partial(
        _cosface_kernel,
        alpha=float(alpha), mrg=float(mrg),
        n_valid_rows=B, n_valid_classes=C, tile_b=TILE_B, tile_c=TILE_C)

    per_sample = pl.pallas_call(
        kernel,
        out_shape=jax.ShapeDtypeStruct((B_pad, 1), jnp.float32),
        grid_spec=pltpu.PrefetchScalarGridSpec(
            num_scalar_prefetch=0,
            grid=(B_pad // TILE_B, C_pad // TILE_C),
            in_specs=[
                pl.BlockSpec((TILE_B, 1), lambda i, k: (i, 0)),      # labels
                pl.BlockSpec((TILE_B, D_pad), lambda i, k: (i, 0)),  # Xn tile
                pl.BlockSpec((TILE_C, D_pad), lambda i, k: (k, 0)),  # Pn tile
            ],
            out_specs=pl.BlockSpec((TILE_B, 1), lambda i, k: (i, 0)),
            scratch_shapes=[
                pltpu.VMEM((TILE_B, 128), jnp.float32),  # lane-folded cos@label
                pltpu.VMEM((TILE_B, 128), jnp.float32),  # lane-folded neg-exp sum
            ],
        ),
        compiler_params=pltpu.CompilerParams(
            dimension_semantics=("parallel", "arbitrary"),
            vmem_limit_bytes=vmem_limit),
    )(Tp, Xn, Pn)

    # Padded rows were zeroed in-kernel; batch mean in the wrapper.
    # TODO(synk): like the PyTorch reference, no log-sum-exp stabilization —
    # exp(-alpha*(cos-mrg)) * nsum can overflow f32 for cos_pos near -1.
    return jnp.sum(per_sample) / jnp.float32(B)


def _cosface_loss_ref(X, T, P, *, mrg=0.35, alpha=64.0):
    """Pure-JAX reference mirroring the PyTorch forward (full f32 matmul)."""
    eps = 1e-12
    x_n = X / jnp.maximum(jnp.linalg.norm(X, axis=-1, keepdims=True), eps)
    p_n = P / jnp.maximum(jnp.linalg.norm(P, axis=-1, keepdims=True), eps)
    cos = jnp.matmul(x_n, p_n.T, precision=lax.Precision.HIGHEST)
    one_hot = jax.nn.one_hot(T, P.shape[0], dtype=jnp.float32)
    pos_exp = jnp.exp(-alpha * (cos - mrg))
    neg_exp = jnp.exp(alpha * cos)
    p_sim = jnp.where(one_hot == 1.0, pos_exp, 0.0)
    n_sim_sum = jnp.sum(jnp.where(one_hot == 0.0, neg_exp, 0.0),
                        axis=1, keepdims=True)
    return jnp.sum(jnp.log(1.0 + p_sim * n_sim_sum)) / X.shape[0]


if __name__ == "__main__":
    nb_classes, sz_embed, batch = 16, 32, 8
    mrg, alpha = 0.35, 64.0

    key = jax.random.PRNGKey(0)
    k_x, k_t, k_p = jax.random.split(key, 3)

    X = jax.random.normal(k_x, (batch, sz_embed), dtype=jnp.float32)
    T = jax.random.randint(k_t, (batch,), 0, nb_classes, dtype=jnp.int32)

    # Proxies: kaiming_uniform_(mode='fan_out') style init (deterministic).
    bound = math.sqrt(2.0) * math.sqrt(3.0 / nb_classes)
    proxies = jax.random.uniform(
        k_p, (nb_classes, sz_embed), dtype=jnp.float32,
        minval=-bound, maxval=bound)

    loss = cosface_loss(X, T, proxies, mrg=mrg, alpha=alpha)
    jax.block_until_ready(loss)

    loss_ref = _cosface_loss_ref(X, T, proxies, mrg=mrg, alpha=alpha)
    # alpha=64 amplifies tiny cosine rounding differences inside exp; 1e-3 on
    # a loss of O(30) is a tight absolute bound (f32 MXU path).
    assert jnp.allclose(loss, loss_ref, rtol=1e-3, atol=1e-3), (loss, loss_ref)

    print("KERNEL_OK")
</pallas_src>

<mosaic_0001>
module attributes {stable_mosaic.version = 11 : i64} {
  func.func @_normalize_pad_kernel(%arg0: i32, %arg1: memref<128x128xf32, #tpu.memory_space<vmem>>, %arg2: memref<128x128xf32, #tpu.memory_space<vmem>>) attributes {dimension_semantics = [#tpu.dimension_semantics<parallel>], iteration_bounds = array<i64: 1>, scalar_prefetch = 0 : i64, scratch_operands = 0 : i64, tpu.core_type = #tpu.core_type<tc>, window_params = [{transform_indices = @transform_0, window_bounds = array<i64: 128, 128>}, {transform_indices = @transform_1, window_bounds = array<i64: 128, 128>}]} {
    %c0 = arith.constant 0 : index
    %c0_0 = arith.constant 0 : index
    %0 = vector.load %arg1[%c0, %c0_0] : memref<128x128xf32, #tpu.memory_space<vmem>>, vector<128x128xf32>
    %1 = tpu.iota {dimensions = array<i32: 0>} : vector<128x1xi32>
    %c128_i32 = arith.constant 128 : i32
    %2 = arith.muli %arg0, %c128_i32 : i32
    %3 = vector.broadcast %2 : i32 to vector<128x1xi32>
    %4 = arith.addi %1, %3 : vector<128x1xi32>
    %5 = tpu.iota {dimensions = array<i32: 1>} : vector<1x128xi32>
    %c16_i32 = arith.constant 16 : i32
    %6 = vector.broadcast %c16_i32 : i32 to vector<128x1xi32>
    %7 = arith.cmpi slt, %4, %6 : vector<128x1xi32>
    %c32_i32 = arith.constant 32 : i32
    %8 = vector.broadcast %c32_i32 : i32 to vector<1x128xi32>
    %9 = arith.cmpi slt, %5, %8 : vector<1x128xi32>
    %10 = vector.broadcast %7 : vector<128x1xi1> to vector<128x128xi1>
    %11 = vector.broadcast %9 : vector<1x128xi1> to vector<128x128xi1>
    %12 = arith.andi %10, %11 : vector<128x128xi1>
    %cst = arith.constant 0.000000e+00 : f32
    %13 = vector.broadcast %cst : f32 to vector<128x128xf32>
    %14 = arith.select %12, %0, %13 : vector<128x128xi1>, vector<128x128xf32>
    %15 = arith.mulf %14, %14 : vector<128x128xf32>
    %cst_1 = arith.constant dense<0.000000e+00> : vector<128xf32>
    %16 = vector.multi_reduction <add>, %15, %cst_1 [1] : vector<128x128xf32> to vector<128xf32>
    %17 = vector.shape_cast %16 : vector<128xf32> to vector<128x1xf32>
    %cst_2 = arith.constant 1.000000e-24 : f32
    %18 = vector.broadcast %cst_2 : f32 to vector<128x1xf32>
    %19 = arith.maximumf %17, %18 : vector<128x1xf32>
    %20 = math.rsqrt %19 : vector<128x1xf32>
    %21 = vector.broadcast %20 : vector<128x1xf32> to vector<128x128xf32>
    %22 = arith.mulf %14, %21 : vector<128x128xf32>
    %c0_3 = arith.constant 0 : index
    %c0_4 = arith.constant 0 : index
    %23 = vector.load %arg2[%c0_3, %c0_4] : memref<128x128xf32, #tpu.memory_space<vmem>>, vector<128x128xf32>
    tpu.vector_store %arg2[%c0_3, %c0_4], %22 {strides = array<i32>} : memref<128x128xf32, #tpu.memory_space<vmem>>, vector<128x128xf32>,
    return
  }
  func.func @transform_0(%arg0: i32) -> (i32, i32) {
    %c0_i32 = arith.constant 0 : i32
    %c0_i32_0 = arith.constant 0 : i32
    return %arg0, %c0_i32 : i32, i32
  }
  func.func @transform_1(%arg0: i32) -> (i32, i32) {
    %c0_i32 = arith.constant 0 : i32
    %c0_i32_0 = arith.constant 0 : i32
    return %arg0, %c0_i32 : i32, i32
  }
}

</mosaic_0001>

<bundles_post_ra>
// kernel: tpu_custom_call.1
= control target key start
LH: loop header
LB: loop body
LE: loop exit
PB: predicated region body
PF: predicated region fallthrough
CT: control target
= control target key end

     0   :  { %6 = vsyncpa [#allocation3], 0  ;;  %s423_s0 = inlined_call_operand.hbm [shape: f32[16,32], index: 0, kind: input, shape index: {}]   ;;  %s424_s1 = inlined_call_operand.hbm [shape: f32[128,128], index: 1, kind: output, shape index: {}]  }
   0x1   :  { %7 = vsyncpa [#allocation4], 0 }
   0x2   :  { %12 = vsyncadd [#allocation3], 1792  ;;  %s373_s6 = smov [#allocation2]   ;;  %s325_s10 = scalar_lea.hbm %s423_s0, 256 }
   0x3   :  { %s13_s7 = sshll.u32 %s373_s6, 4  ;;  %p326_p0 = scmp.ne.s32.totalorder %s423_s0, %s325_s10  ;;  %s14_s7 = int_to_ptr.vmem [resolvable:$true] %s13_s7 }
   0x4   :  { %p329_p1 = scmp.lt.u32.totalorder %s325_s10, %s423_s0 }
   0x6   :  { %p331_p2 = pnand %p329_p1, %p326_p0 }
   0x8   :  { %334 = shalt.err (!%p331_p2)
}
   0x9   :  { %s335_s15 = scalar_lea.vmem %s14_s7, 256  ;;  %s339_s16 = scalar_lea.vmem %s14_s7, 2048 }
   0xa   :  { %p336_p3 = scmp.ne.s32.totalorder %s14_s7, %s335_s15  ;;  %p340_p4 = scmp.lt.s32.totalorder %s14_s7, %s14_s7 }
   0xb   :  { %p341_p5 = scmp.lt.s32.totalorder %s339_s16, %s335_s15 }
   0xd   :  { %p342_p6 = por %p341_p5, %p340_p4 }
   0xf   :  { %p343_p7 = pnand %p342_p6, %p336_p3 }
  0x11   :  { %346 = shalt.err (!%p343_p7)
}
  0x12   :  { %s374_s17 = smov 128   ;;  %s375_s18 = smov 8  }
  0x13   :  { %19 = dma.hbm_to_vmem [thread:$0]  %s423_s0, 256, %s14_s7, [#allocation3], %s374_s17, %s374_s17, %s375_s18  }
  0x14   :  { %369 = dma.done.wait [#allocation3], 2048  }
  0x15   :  { %370 = vsyncadd [#allocation3], 4294965248  ;;  %v74_v0 = vlaneseq  ;;  %v376_v1 = vmov 0.0   ;;  %v23_v3 = vld [vmem:[#allocation2] sm:$0xff]  ;;  %v24_v4 = vld [vmem:[#allocation2 + $0x8] sm:$0xff]  ;;  %s377_s0 = smov [#allocation5]  }
  0x16   :  { %183 = vadd.xlane.f32.xlu0 %v376_v1  ;;  %179 = vadd.xlane.f32.xlu1 %v376_v1  ;;  %s276_s21 = sshll.u32 %s377_s0, 4  ;;  %s277_s21 = int_to_ptr.vmem [resolvable:$true] %s276_s21 }
  0x17   :  { %v75_v2 = vand.u32 127, %v74_v0  ;;  %s347_s22 = scalar_lea.vmem %s277_s21, 2048  ;;  %p352_p9 = scmp.lt.s32.totalorder %s277_s21, %s277_s21 }
  0x18   :  { %p348_p8 = scmp.ne.s32.totalorder %s277_s21, %s347_s22  ;;  %p353_p10 = scmp.lt.s32.totalorder %s347_s22, %s347_s22 }
  0x19   :  { %vm92_vm0 = vcmp.lt.s32.totalorder %v75_v2, 32 }
  0x1a   :  { %181 = vadd.xlane.f32.xlu1 %v376_v1  ;;  %v143_v5 = vsel %vm92_vm0, %v23_v3, 0.0  ;;  %v403_v6 = vsel %vm92_vm0, %v24_v4, 0.0  ;;  %p354_p11 = por %p353_p10, %p352_p9 }
  0x1b   :  { %v159_v7 = vmul.f32 %v143_v5, %v143_v5  ;;  %v160_v8 = vmul.f32 %v403_v6, %v403_v6 }
  0x1c   :  { %p355_p12 = pnand %p354_p11, %p348_p8 }
  0x1d   :  { %175 = vadd.xlane.f32.xlu0 %v159_v7 }
  0x1e   :  { %185 = vadd.xlane.f32.xlu1 %v376_v1 }
  0x21   :  { %177 = vadd.xlane.f32.xlu0 %v160_v8 }
  0x22   :  { %189 = vadd.xlane.f32.xlu1 %v376_v1 }
  0x25   :  { %187 = vadd.xlane.f32.xlu0 %v376_v1 }
  0x26   :  { %193 = vadd.xlane.f32.xlu1 %v376_v1 }
  0x29   :  { %191 = vadd.xlane.f32.xlu0 %v376_v1 }
  0x2a   :  { %197 = vadd.xlane.f32.xlu1 %v376_v1 }
  0x2d   :  { %195 = vadd.xlane.f32.xlu0 %v376_v1 }
  0x2e   :  { %201 = vadd.xlane.f32.xlu1 %v376_v1 }
  0x31   :  { %199 = vadd.xlane.f32.xlu0 %v376_v1 }
  0x32   :  { %205 = vadd.xlane.f32.xlu1 %v376_v1 }
  0x35   :  { %203 = vadd.xlane.f32.xlu0 %v376_v1 }
  0xa3   :  { %v184_v9 = vpop.xlane.xlu0 %183  ;;  %v180_v10 = vpop.xlane.xlu1 %179 }
  0xa4   :  { %v211_v11 = vmax.f32 %v184_v9, 1e-24  ;;  %v209_v12 = vmax.f32 %v180_v10, 1e-24 }
  0xa6   :  { %293 = vrsqrt.f32 %v211_v11 }
  0xa7   :  { %295 = vrsqrt.f32 %v209_v12  ;;  %v182_v13 = vpop.xlane.xlu1 %181 }
  0xa8   :  { %v210_v14 = vmax.f32 %v182_v13, 1e-24 }
  0xaa   :  { %297 = vrsqrt.f32 %v210_v14  ;;  %v176_v17 = vpop.xlane.xlu0 %175 }
  0xab   :  { %v186_v15 = vpop.xlane.xlu1 %185  ;;  %v207_v18 = vmax.f32 %v176_v17, 1e-24 }
  0xac   :  { %v212_v16 = vmax.f32 %v186_v15, 1e-24 }
  0xae   :  { %299 = vrsqrt.f32 %v212_v16  ;;  %v178_v24 = vpop.xlane.xlu0 %177 }
  0xaf   :  { %v190_v19 = vpop.xlane.xlu1 %189  ;;  %301 = vrsqrt.f32 %v207_v18  ;;  %v208_v26 = vmax.f32 %v178_v24, 1e-24 }
  0xb0   :  { %v294_v20 = vpop.eup %293  ;;  %v214_v21 = vmax.f32 %v190_v19, 1e-24 }
  0xb1   :  { %v296_v22 = vpop.eup %295  ;;  %v243_v23 = vmul.f32 0.0, %v294_v20 }
  0xb2   :  { %v241_v25 = vmul.f32 0.0, %v296_v22  ;;  %303 = vrsqrt.f32 %v214_v21  ;;  %v188_v31 = vpop.xlane.xlu0 %187 }
  0xb3   :  { %259 = vst [vmem:[#allocation5 + $0x20] sm:$0xff] %v243_v23  ;;  %v194_v27 = vpop.xlane.xlu1 %193  ;;  %305 = vrsqrt.f32 %v208_v26  ;;  %v213_v32 = vmax.f32 %v188_v31, 1e-24 }
  0xb4   :  { %v298_v28 = vpop.eup %297  ;;  %257 = vst [vmem:[#allocation5 + $0x10] sm:$0xff] %v241_v25  ;;  %v216_v29 = vmax.f32 %v194_v27, 1e-24 }
  0xb5   :  { %v242_v30 = vmul.f32 0.0, %v298_v28 }
  0xb6   :  { %307 = vrsqrt.f32 %v216_v29  ;;  %v192_v37 = vpop.xlane.xlu0 %191 }
  0xb7   :  { %258 = vst [vmem:[#allocation5 + $0x18] sm:$0xff] %v242_v30  ;;  %v198_v33 = vpop.xlane.xlu1 %197  ;;  %309 = vrsqrt.f32 %v213_v32  ;;  %v215_v39 = vmax.f32 %v192_v37, 1e-24 }
  0xb8   :  { %v300_v34 = vpop.eup %299  ;;  %v218_v35 = vmax.f32 %v198_v33, 1e-24 }
  0xb9   :  { %v244_v36 = vmul.f32 0.0, %v300_v34  ;;  %v302_v38 = vpop.eup %301 }
  0xba   :  { %311 = vrsqrt.f32 %v218_v35  ;;  %v239_v40 = vmul.f32 %v302_v38, %v143_v5  ;;  %v196_v45 = vpop.xlane.xlu0 %195 }
  0xbb   :  { %260 = vst [vmem:[#allocation5 + $0x28] sm:$0xff] %v244_v36  ;;  %v202_v41 = vpop.xlane.xlu1 %201  ;;  %313 = vrsqrt.f32 %v215_v39  ;;  %v217_v47 = vmax.f32 %v196_v45, 1e-24 }
  0xbc   :  { %v304_v42 = vpop.eup %303  ;;  %v220_v43 = vmax.f32 %v202_v41, 1e-24  ;;  %255 = vst [vmem:[#allocation5] sm:$0xff] %v239_v40 }
  0xbd   :  { %v246_v44 = vmul.f32 0.0, %v304_v42  ;;  %v306_v46 = vpop.eup %305 }
  0xbe   :  { %315 = vrsqrt.f32 %v220_v43  ;;  %v240_v48 = vmul.f32 %v306_v46, %v403_v6  ;;  %v200_v53 = vpop.xlane.xlu0 %199 }
  0xbf   :  { %262 = vst [vmem:[#allocation5 + $0x38] sm:$0xff] %v246_v44  ;;  %v206_v49 = vpop.xlane.xlu1 %205  ;;  %317 = vrsqrt.f32 %v217_v47  ;;  %v219_v55 = vmax.f32 %v200_v53, 1e-24 }
  0xc0   :  { %v308_v50 = vpop.eup %307  ;;  %v222_v51 = vmax.f32 %v206_v49, 1e-24  ;;  %256 = vst [vmem:[#allocation5 + $0x8] sm:$0xff] %v240_v48 }
  0xc1   :  { %v248_v52 = vmul.f32 0.0, %v308_v50  ;;  %v310_v54 = vpop.eup %309 }
  0xc2   :  { %319 = vrsqrt.f32 %v222_v51  ;;  %v245_v56 = vmul.f32 0.0, %v310_v54  ;;  %v204_v59 = vpop.xlane.xlu0 %203 }
  0xc3   :  { %264 = vst [vmem:[#allocation5 + $0x48] sm:$0xff] %v248_v52  ;;  %321 = vrsqrt.f32 %v219_v55  ;;  %v221_v61 = vmax.f32 %v204_v59, 1e-24 }
  0xc4   :  { %v312_v57 = vpop.eup %311  ;;  %261 = vst [vmem:[#allocation5 + $0x30] sm:$0xff] %v245_v56 }
  0xc5   :  { %v250_v58 = vmul.f32 0.0, %v312_v57  ;;  %v314_v60 = vpop.eup %313  ;;  %323 = vrsqrt.f32 %v221_v61 }
  0xc6   :  { %v247_v62 = vmul.f32 0.0, %v314_v60 }
  0xc7   :  { %266 = vst [vmem:[#allocation5 + $0x58] sm:$0xff] %v250_v58 }
  0xc8   :  { %v316_v63 = vpop.eup %315  ;;  %263 = vst [vmem:[#allocation5 + $0x40] sm:$0xff] %v247_v62 }
  0xc9   :  { %v252_v0 = vmul.f32 0.0, %v316_v63  ;;  %v318_v1 = vpop.eup %317 }
  0xca   :  { %v249_v2 = vmul.f32 0.0, %v318_v1 }
  0xcb   :  { %268 = vst [vmem:[#allocation5 + $0x68] sm:$0xff] %v252_v0 }
  0xcc   :  { %v320_v3 = vpop.eup %319  ;;  %265 = vst [vmem:[#allocation5 + $0x50] sm:$0xff] %v249_v2 }
  0xcd   :  { %v254_v4 = vmul.f32 0.0, %v320_v3  ;;  %v322_v5 = vpop.eup %321 }
  0xce   :  { %v251_v6 = vmul.f32 0.0, %v322_v5 }
  0xcf   :  { %270 = vst [vmem:[#allocation5 + $0x78] sm:$0xff] %v254_v4  ;;  %v324_v7 = vpop.eup %323 }
  0xd0   :  { %267 = vst [vmem:[#allocation5 + $0x60] sm:$0xff] %v251_v6  ;;  %v253_v8 = vmul.f32 0.0, %v324_v7 }
  0xd2   :  { %269 = vst [vmem:[#allocation5 + $0x70] sm:$0xff] %v253_v8 }
  0xd3   :  { %358 = shalt.err (!%p355_p12)
}
  0xd4   :  { %s359_s25 = scalar_lea.hbm %s424_s1, 2048 }
  0xd5   :  { %p360_p13 = scmp.ne.s32.totalorder %s424_s1, %s359_s25  ;;  %p363_p0 = scmp.lt.u32.totalorder %s359_s25, %s424_s1 }
  0xd7   :  { %p365_p1 = pnand %p363_p0, %p360_p13 }
  0xd9   :  { %368 = shalt.err (!%p365_p1)
}
  0xda   :  { %282 = dma.vmem_to_hbm [thread:$0]  %s277_s21, 2048, %s424_s1, [#allocation4], %s374_s17, %s374_s17, %s375_s18  }
  0xdb   :  { %371 = dma.done.wait [#allocation4], 2048  }
  0xdc   :  { %372 = vsyncadd [#allocation4], 4294965248 }
  0xdd   :  { %286 = vsyncpa [#allocation3], 1 }
  0xde   :  { %287 = vsyncpa [#allocation4], 1 }

</bundles_post_ra>
